<compile_context>
chip_gen: v5e
topology: v5e:2x2
jax: 0.10.0
libtpu: 0.0.40
codegen_flags: <defaults>
</compile_context>

<pallas_src>
import jax
import jax.numpy as jnp
from jax.experimental import pallas as pl
from jax.experimental.pallas import tpu as pltpu


KH = KW = 3  # prune-target conv kernel size (3x3, stride=1, padding=1)


def _tensorcores_per_chip():
    """v7x has 2 TensorCores per chip; v5e/v6e have 1.  Fallback: 1."""
    try:
        kind = jax.devices()[0].device_kind.lower()
    except Exception:
        return 1
    return 2 if "v7" in kind else 1


def _shift_lanes(x, s, hw):
    """result[..., p] = x[..., (p + s) % hw].

    Explicit slice+concat (identical to jnp.roll(x, -s)); wrapped entries are
    zeroed by the caller's boundary masks.  Lowers to XLU lane rotations.
    """
    k = s % hw
    if k == 0:
        return x
    return jnp.concatenate([x[..., k:], x[..., :k]], axis=-1)


# --------------------------- fused conv kernel ------------------------------ #
def _make_conv3x3_kernel(cin, cout, h, w, nb):
    hw = h * w
    pow2 = (w & (w - 1)) == 0
    log2w = w.bit_length() - 1

    def kernel(x_ref, w_ref, b_ref, o_ref, k_ref):
        # x_ref: (nb, cin, hw)        raw flattened images (no halo pad)
        # w_ref: (cout, KH*KW*cin)    fused im2col weights (one tile)
        # b_ref: (cout, hw)           bias, pre-broadcast over lanes
        # o_ref: (nb, cout, hw)       lane-dense output (hw = 256)
        # k_ref: (KH*KW*cin, hw)      VMEM scratch: stacked im2col taps
        w2 = w_ref[...]
        bias = b_ref[...]

        # Boundary masks: hoisted, depend only on the flat pixel index.
        pos = jax.lax.broadcasted_iota(jnp.int32, (1, hw), 1)
        if pow2:
            col = pos & (w - 1)
            row = pos >> log2w
        else:
            col = pos % w
            row = pos // w
        row_ok = (row >= 1, None, row <= h - 2)   # dh = 0, 1, 2
        col_ok = (col >= 1, None, col <= w - 2)   # dw = 0, 1, 2
        masks = []
        for dh in range(KH):
            for dw in range(KW):
                m = row_ok[dh]
                if col_ok[dw] is not None:
                    m = col_ok[dw] if m is None else (m & col_ok[dw])
                masks.append(m)

        for bi in range(nb):                      # nb is a small static int
            xi = x_ref[bi]                        # (cin, hw)
            for t in range(KH * KW):
                dh, dw = divmod(t, KW)
                s = (dh - 1) * w + (dw - 1)       # flat shift of this tap
                tap = _shift_lanes(xi, s, hw)     # lane rotation
                if masks[t] is not None:
                    tap = jnp.where(masks[t], tap, 0.0)
                k_ref[pl.ds(t * cin, cin), :] = tap
            # ONE fused K = KH*KW*cin matmul on the MXU, bias folded in as a
            # full-tile add (pre-broadcast host-side).
            o_ref[bi] = (
                jnp.dot(w2, k_ref[...], preferred_element_type=jnp.float32)
                + bias
            )

    return kernel


def _conv3x3_same_pallas(xf, w2, bias_full, *, n, cin, cout, h, w, nb):
    hw = h * w
    num_blocks = n // nb
    kernel = _make_conv3x3_kernel(cin, cout, h, w, nb)
    return pl.pallas_call(
        kernel,
        out_shape=jax.ShapeDtypeStruct((n, cout, hw), jnp.float32),
        grid=(num_blocks,),
        in_specs=[
            pl.BlockSpec((nb, cin, hw), lambda i: (i, 0, 0)),        # images
            pl.BlockSpec((cout, KH * KW * cin), lambda i: (0, 0)),   # invariant
            pl.BlockSpec((cout, hw), lambda i: (0, 0)),              # invariant
        ],
        out_specs=pl.BlockSpec((nb, cout, hw), lambda i: (i, 0, 0)),
        scratch_shapes=[pltpu.VMEM((KH * KW * cin, hw), jnp.float32)],
        compiler_params=pltpu.CompilerParams(
            dimension_semantics=("parallel",)),
    )(xf, w2, bias_full)


# ------------------------ wrapped conv module ------------------------------- #
class Conv2dSame3x3:
    """Conv2d(cin, cout, 3, stride=1, padding=1, bias=True) with a Pallas core."""

    def __init__(self, key, cin, cout):
        kw_key, kb_key = jax.random.split(key)
        fan_in = cin * KH * KW
        self.weight = (jax.random.normal(kw_key, (cout, cin, KH, KW), jnp.float32)
                       * (2.0 / fan_in) ** 0.5)
        self.bias = jax.random.normal(kb_key, (cout,), jnp.float32) * 0.01
        self.cin, self.cout = cin, cout
        # fused im2col weight layout, built once: W2[o, (dh*KW+dw)*cin + c]
        self.w2 = jnp.transpose(self.weight, (0, 2, 3, 1)).reshape(
            cout, KH * KW * cin)
        self._bias_full = {}  # hw -> (cout, hw) lane-broadcast bias (built once)

    def _bias_for(self, hw):
        b = self._bias_full.get(hw)
        if b is None:
            b = jnp.broadcast_to(self.bias.reshape(self.cout, 1),
                                 (self.cout, hw))
            self._bias_full[hw] = b
        return b

    def __call__(self, x):
        n, c, h, w = x.shape
        assert c == self.cin
        hw = h * w
        # Generation-aware batch blocking: one block per TensorCore on v7x,
        # otherwise the whole batch in a single grid step (v5e/v6e: 1 TC).
        cores = _tensorcores_per_chip()
        num_blocks = cores if (cores > 1 and n % cores == 0) else 1
        nb = n // num_blocks
        xf = x.reshape(n, c, hw)                        # free contiguous reshape
        out = _conv3x3_same_pallas(xf, self.w2, self._bias_for(hw),
                                   n=n, cin=c, cout=self.cout, h=h, w=w, nb=nb)
        return out.reshape(n, self.cout, h, w)          # free, NCHW


# ----------------------------- BasisLayer ----------------------------------- #
class OriginalBasisLayer:
    """OriginalBasisLayer(module): forward == nn.Sequential(module)(x)."""

    def __init__(self, module):
        self.sequential = (module,)

    def __call__(self, x):
        out = x
        for m in self.sequential:
            out = m(out)
        return out


class BasisLayer:
    """BasisLayer(module): forward == OriginalBasisLayer(module)(x)."""

    def __init__(self, module):
        self.basis = OriginalBasisLayer(module)

    def __call__(self, x):
        return self.basis(x)


# ------------------------------- main --------------------------------------- #
if __name__ == "__main__":
    key = jax.random.PRNGKey(0)
    k_x, k_p = jax.random.split(key)

    x = jax.random.normal(k_x, (2, 4, 16, 16), jnp.float32)   # NCHW

    conv = Conv2dSame3x3(k_p, cin=4, cout=8)
    layer = BasisLayer(conv)

    y = jax.block_until_ready(layer(x))

    # sanity check against XLA's native conv (forced f32 accumulation)
    ref = jax.lax.conv_general_dilated(
        x, conv.weight, window_strides=(1, 1), padding="SAME",
        dimension_numbers=("NCHW", "OIHW", "NCHW"),
        precision=jax.lax.Precision.HIGHEST,
    ) + conv.bias.reshape(1, -1, 1, 1)

    assert y.shape == (2, 8, 16, 16)
    assert jnp.max(jnp.abs(y - ref)) < 1e-4

    print("KERNEL_OK")
</pallas_src>

<mosaic_0001>
module attributes {stable_mosaic.version = 11 : i64} {
  func.func @kernel(%arg0: i32, %arg1: memref<2x4x256xf32, #tpu.memory_space<vmem>>, %arg2: memref<8x36xf32, #tpu.memory_space<vmem>>, %arg3: memref<8x256xf32, #tpu.memory_space<vmem>>, %arg4: memref<2x8x256xf32, #tpu.memory_space<vmem>>, %arg5: memref<36x256xf32, #tpu.memory_space<vmem>>) attributes {dimension_semantics = [#tpu.dimension_semantics<parallel>], iteration_bounds = array<i64: 1>, scalar_prefetch = 0 : i64, scratch_operands = 1 : i64, tpu.core_type = #tpu.core_type<tc>, window_params = [{transform_indices = @transform_0, window_bounds = array<i64: 2, 4, 256>}, {pipeline_mode = #tpu.pipeline_mode<synchronous>, transform_indices = @transform_1, window_bounds = array<i64: 8, 36>}, {pipeline_mode = #tpu.pipeline_mode<synchronous>, transform_indices = @transform_2, window_bounds = array<i64: 8, 256>}, {transform_indices = @transform_3, window_bounds = array<i64: 2, 8, 256>}]} {
    %c0 = arith.constant 0 : index
    %c0_0 = arith.constant 0 : index
    %0 = vector.load %arg2[%c0, %c0_0] : memref<8x36xf32, #tpu.memory_space<vmem>>, vector<8x36xf32>
    %c0_1 = arith.constant 0 : index
    %c0_2 = arith.constant 0 : index
    %1 = vector.load %arg3[%c0_1, %c0_2] : memref<8x256xf32, #tpu.memory_space<vmem>>, vector<8x256xf32>
    %2 = tpu.iota {dimensions = array<i32: 1>} : vector<1x256xi32>
    %c15_i32 = arith.constant 15 : i32
    %3 = vector.broadcast %c15_i32 : i32 to vector<1x256xi32>
    %4 = arith.andi %2, %3 : vector<1x256xi32>
    %c4_i32 = arith.constant 4 : i32
    %5 = vector.broadcast %c4_i32 : i32 to vector<1x256xi32>
    %6 = arith.shrsi %2, %5 : vector<1x256xi32>
    %c1_i32 = arith.constant 1 : i32
    %7 = vector.broadcast %c1_i32 : i32 to vector<1x256xi32>
    %8 = arith.cmpi sge, %6, %7 : vector<1x256xi32>
    %c14_i32 = arith.constant 14 : i32
    %9 = vector.broadcast %c14_i32 : i32 to vector<1x256xi32>
    %10 = arith.cmpi sle, %6, %9 : vector<1x256xi32>
    %c1_i32_3 = arith.constant 1 : i32
    %11 = vector.broadcast %c1_i32_3 : i32 to vector<1x256xi32>
    %12 = arith.cmpi sge, %4, %11 : vector<1x256xi32>
    %c14_i32_4 = arith.constant 14 : i32
    %13 = vector.broadcast %c14_i32_4 : i32 to vector<1x256xi32>
    %14 = arith.cmpi sle, %4, %13 : vector<1x256xi32>
    %15 = arith.andi %8, %12 : vector<1x256xi1>
    %16 = arith.andi %8, %14 : vector<1x256xi1>
    %17 = arith.andi %10, %12 : vector<1x256xi1>
    %18 = arith.andi %10, %14 : vector<1x256xi1>
    %c0_5 = arith.constant 0 : index
    %c0_6 = arith.constant 0 : index
    %c0_7 = arith.constant 0 : index
    %19 = vector.load %arg1[%c0_5, %c0_6, %c0_7] : memref<2x4x256xf32, #tpu.memory_space<vmem>>, vector<1x4x256xf32>
    %20 = vector.shape_cast %19 : vector<1x4x256xf32> to vector<4x256xf32>
    %21 = vector.extract_strided_slice %20 {offsets = [0, 239], sizes = [4, 17], strides = [1, 1]} : vector<4x256xf32> to vector<4x17xf32>
    %22 = vector.extract_strided_slice %20 {offsets = [0, 0], sizes = [4, 239], strides = [1, 1]} : vector<4x256xf32> to vector<4x239xf32>
    %23 = tpu.concatenate %21, %22 in 1 : vector<4x17xf32>, vector<4x239xf32> -> vector<4x256xf32>
    %cst = arith.constant 0.000000e+00 : f32
    %24 = vector.shape_cast %15 : vector<1x256xi1> to vector<1x256xi1>
    %25 = vector.broadcast %24 : vector<1x256xi1> to vector<4x256xi1>
    %26 = vector.broadcast %cst : f32 to vector<4x256xf32>
    %27 = arith.select %25, %23, %26 : vector<4x256xi1>, vector<4x256xf32>
    %c0_8 = arith.constant 0 : index
    %c0_9 = arith.constant 0 : index
    %28 = vector.load %arg5[%c0_8, %c0_9] : memref<36x256xf32, #tpu.memory_space<vmem>>, vector<4x256xf32>
    tpu.vector_store %arg5[%c0_8, %c0_9], %27 {strides = array<i32>} : memref<36x256xf32, #tpu.memory_space<vmem>>, vector<4x256xf32>,
    %29 = vector.extract_strided_slice %20 {offsets = [0, 240], sizes = [4, 16], strides = [1, 1]} : vector<4x256xf32> to vector<4x16xf32>
    %30 = vector.extract_strided_slice %20 {offsets = [0, 0], sizes = [4, 240], strides = [1, 1]} : vector<4x256xf32> to vector<4x240xf32>
    %31 = tpu.concatenate %29, %30 in 1 : vector<4x16xf32>, vector<4x240xf32> -> vector<4x256xf32>
    %cst_10 = arith.constant 0.000000e+00 : f32
    %32 = vector.shape_cast %8 : vector<1x256xi1> to vector<1x256xi1>
    %33 = vector.broadcast %32 : vector<1x256xi1> to vector<4x256xi1>
    %34 = vector.broadcast %cst_10 : f32 to vector<4x256xf32>
    %35 = arith.select %33, %31, %34 : vector<4x256xi1>, vector<4x256xf32>
    %c4 = arith.constant 4 : index
    %c0_11 = arith.constant 0 : index
    %36 = vector.load %arg5[%c4, %c0_11] : memref<36x256xf32, #tpu.memory_space<vmem>>, vector<4x256xf32>
    tpu.vector_store %arg5[%c4, %c0_11], %35 {strides = array<i32>} : memref<36x256xf32, #tpu.memory_space<vmem>>, vector<4x256xf32>,
    %37 = vector.extract_strided_slice %20 {offsets = [0, 241], sizes = [4, 15], strides = [1, 1]} : vector<4x256xf32> to vector<4x15xf32>
    %38 = vector.extract_strided_slice %20 {offsets = [0, 0], sizes = [4, 241], strides = [1, 1]} : vector<4x256xf32> to vector<4x241xf32>
    %39 = tpu.concatenate %37, %38 in 1 : vector<4x15xf32>, vector<4x241xf32> -> vector<4x256xf32>
    %cst_12 = arith.constant 0.000000e+00 : f32
    %40 = vector.shape_cast %16 : vector<1x256xi1> to vector<1x256xi1>
    %41 = vector.broadcast %40 : vector<1x256xi1> to vector<4x256xi1>
    %42 = vector.broadcast %cst_12 : f32 to vector<4x256xf32>
    %43 = arith.select %41, %39, %42 : vector<4x256xi1>, vector<4x256xf32>
    %c8 = arith.constant 8 : index
    %c0_13 = arith.constant 0 : index
    %44 = vector.load %arg5[%c8, %c0_13] : memref<36x256xf32, #tpu.memory_space<vmem>>, vector<4x256xf32>
    tpu.vector_store %arg5[%c8, %c0_13], %43 {strides = array<i32>} : memref<36x256xf32, #tpu.memory_space<vmem>>, vector<4x256xf32>,
    %45 = vector.extract_strided_slice %20 {offsets = [0, 255], sizes = [4, 1], strides = [1, 1]} : vector<4x256xf32> to vector<4x1xf32>
    %46 = vector.extract_strided_slice %20 {offsets = [0, 0], sizes = [4, 255], strides = [1, 1]} : vector<4x256xf32> to vector<4x255xf32>
    %47 = tpu.concatenate %45, %46 in 1 : vector<4x1xf32>, vector<4x255xf32> -> vector<4x256xf32>
    %cst_14 = arith.constant 0.000000e+00 : f32
    %48 = vector.shape_cast %12 : vector<1x256xi1> to vector<1x256xi1>
    %49 = vector.broadcast %48 : vector<1x256xi1> to vector<4x256xi1>
    %50 = vector.broadcast %cst_14 : f32 to vector<4x256xf32>
    %51 = arith.select %49, %47, %50 : vector<4x256xi1>, vector<4x256xf32>
    %c12 = arith.constant 12 : index
    %c0_15 = arith.constant 0 : index
    %52 = vector.load %arg5[%c12, %c0_15] : memref<36x256xf32, #tpu.memory_space<vmem>>, vector<4x256xf32>
    tpu.vector_store %arg5[%c12, %c0_15], %51 {strides = array<i32>} : memref<36x256xf32, #tpu.memory_space<vmem>>, vector<4x256xf32>,
    %c16 = arith.constant 16 : index
    %c0_16 = arith.constant 0 : index
    %53 = vector.load %arg5[%c16, %c0_16] : memref<36x256xf32, #tpu.memory_space<vmem>>, vector<4x256xf32>
    tpu.vector_store %arg5[%c16, %c0_16], %20 {strides = array<i32>} : memref<36x256xf32, #tpu.memory_space<vmem>>, vector<4x256xf32>,
    %54 = vector.extract_strided_slice %20 {offsets = [0, 1], sizes = [4, 255], strides = [1, 1]} : vector<4x256xf32> to vector<4x255xf32>
    %55 = vector.extract_strided_slice %20 {offsets = [0, 0], sizes = [4, 1], strides = [1, 1]} : vector<4x256xf32> to vector<4x1xf32>
    %56 = tpu.concatenate %54, %55 in 1 : vector<4x255xf32>, vector<4x1xf32> -> vector<4x256xf32>
    %cst_17 = arith.constant 0.000000e+00 : f32
    %57 = vector.shape_cast %14 : vector<1x256xi1> to vector<1x256xi1>
    %58 = vector.broadcast %57 : vector<1x256xi1> to vector<4x256xi1>
    %59 = vector.broadcast %cst_17 : f32 to vector<4x256xf32>
    %60 = arith.select %58, %56, %59 : vector<4x256xi1>, vector<4x256xf32>
    %c20 = arith.constant 20 : index
    %c0_18 = arith.constant 0 : index
    %61 = vector.load %arg5[%c20, %c0_18] : memref<36x256xf32, #tpu.memory_space<vmem>>, vector<4x256xf32>
    tpu.vector_store %arg5[%c20, %c0_18], %60 {strides = array<i32>} : memref<36x256xf32, #tpu.memory_space<vmem>>, vector<4x256xf32>,
    %62 = vector.extract_strided_slice %20 {offsets = [0, 15], sizes = [4, 241], strides = [1, 1]} : vector<4x256xf32> to vector<4x241xf32>
    %63 = vector.extract_strided_slice %20 {offsets = [0, 0], sizes = [4, 15], strides = [1, 1]} : vector<4x256xf32> to vector<4x15xf32>
    %64 = tpu.concatenate %62, %63 in 1 : vector<4x241xf32>, vector<4x15xf32> -> vector<4x256xf32>
    %cst_19 = arith.constant 0.000000e+00 : f32
    %65 = vector.shape_cast %17 : vector<1x256xi1> to vector<1x256xi1>
    %66 = vector.broadcast %65 : vector<1x256xi1> to vector<4x256xi1>
    %67 = vector.broadcast %cst_19 : f32 to vector<4x256xf32>
    %68 = arith.select %66, %64, %67 : vector<4x256xi1>, vector<4x256xf32>
    %c24 = arith.constant 24 : index
    %c0_20 = arith.constant 0 : index
    %69 = vector.load %arg5[%c24, %c0_20] : memref<36x256xf32, #tpu.memory_space<vmem>>, vector<4x256xf32>
    tpu.vector_store %arg5[%c24, %c0_20], %68 {strides = array<i32>} : memref<36x256xf32, #tpu.memory_space<vmem>>, vector<4x256xf32>,
    %70 = vector.extract_strided_slice %20 {offsets = [0, 16], sizes = [4, 240], strides = [1, 1]} : vector<4x256xf32> to vector<4x240xf32>
    %71 = vector.extract_strided_slice %20 {offsets = [0, 0], sizes = [4, 16], strides = [1, 1]} : vector<4x256xf32> to vector<4x16xf32>
    %72 = tpu.concatenate %70, %71 in 1 : vector<4x240xf32>, vector<4x16xf32> -> vector<4x256xf32>
    %cst_21 = arith.constant 0.000000e+00 : f32
    %73 = vector.shape_cast %10 : vector<1x256xi1> to vector<1x256xi1>
    %74 = vector.broadcast %73 : vector<1x256xi1> to vector<4x256xi1>
    %75 = vector.broadcast %cst_21 : f32 to vector<4x256xf32>
    %76 = arith.select %74, %72, %75 : vector<4x256xi1>, vector<4x256xf32>
    %c28 = arith.constant 28 : index
    %c0_22 = arith.constant 0 : index
    %77 = vector.load %arg5[%c28, %c0_22] : memref<36x256xf32, #tpu.memory_space<vmem>>, vector<4x256xf32>
    tpu.vector_store %arg5[%c28, %c0_22], %76 {strides = array<i32>} : memref<36x256xf32, #tpu.memory_space<vmem>>, vector<4x256xf32>,
    %78 = vector.extract_strided_slice %20 {offsets = [0, 17], sizes = [4, 239], strides = [1, 1]} : vector<4x256xf32> to vector<4x239xf32>
    %79 = vector.extract_strided_slice %20 {offsets = [0, 0], sizes = [4, 17], strides = [1, 1]} : vector<4x256xf32> to vector<4x17xf32>
    %80 = tpu.concatenate %78, %79 in 1 : vector<4x239xf32>, vector<4x17xf32> -> vector<4x256xf32>
    %cst_23 = arith.constant 0.000000e+00 : f32
    %81 = vector.shape_cast %18 : vector<1x256xi1> to vector<1x256xi1>
    %82 = vector.broadcast %81 : vector<1x256xi1> to vector<4x256xi1>
    %83 = vector.broadcast %cst_23 : f32 to vector<4x256xf32>
    %84 = arith.select %82, %80, %83 : vector<4x256xi1>, vector<4x256xf32>
    %c32 = arith.constant 32 : index
    %c0_24 = arith.constant 0 : index
    %85 = vector.load %arg5[%c32, %c0_24] : memref<36x256xf32, #tpu.memory_space<vmem>>, vector<4x256xf32>
    tpu.vector_store %arg5[%c32, %c0_24], %84 {strides = array<i32>} : memref<36x256xf32, #tpu.memory_space<vmem>>, vector<4x256xf32>,
    %c0_25 = arith.constant 0 : index
    %c0_26 = arith.constant 0 : index
    %86 = vector.load %arg5[%c0_25, %c0_26] : memref<36x256xf32, #tpu.memory_space<vmem>>, vector<36x256xf32>
    %cst_27 = arith.constant dense<0.000000e+00> : vector<8x256xf32>
    %87 = tpu.matmul %0, %86, %cst_27 {dimension_numbers = #tpu.dot_dimension_numbers<[1], [0], [0], [1], [0, 0, 1, 1], [], []>} : vector<8x36xf32>, vector<36x256xf32>, vector<8x256xf32> -> vector<8x256xf32>
    %88 = arith.addf %87, %1 : vector<8x256xf32>
    %c0_28 = arith.constant 0 : index
    %c0_29 = arith.constant 0 : index
    %c0_30 = arith.constant 0 : index
    %89 = vector.load %arg4[%c0_28, %c0_29, %c0_30] : memref<2x8x256xf32, #tpu.memory_space<vmem>>, vector<1x8x256xf32>
    %90 = vector.shape_cast %89 : vector<1x8x256xf32> to vector<8x256xf32>
    %91 = vector.shape_cast %88 : vector<8x256xf32> to vector<1x8x256xf32>
    tpu.vector_store %arg4[%c0_28, %c0_29, %c0_30], %91 {strides = array<i32>} : memref<2x8x256xf32, #tpu.memory_space<vmem>>, vector<1x8x256xf32>,
    %c1 = arith.constant 1 : index
    %c0_31 = arith.constant 0 : index
    %c0_32 = arith.constant 0 : index
    %92 = vector.load %arg1[%c1, %c0_31, %c0_32] : memref<2x4x256xf32, #tpu.memory_space<vmem>>, vector<1x4x256xf32>
    %93 = vector.shape_cast %92 : vector<1x4x256xf32> to vector<4x256xf32>
    %94 = vector.extract_strided_slice %93 {offsets = [0, 239], sizes = [4, 17], strides = [1, 1]} : vector<4x256xf32> to vector<4x17xf32>
    %95 = vector.extract_strided_slice %93 {offsets = [0, 0], sizes = [4, 239], strides = [1, 1]} : vector<4x256xf32> to vector<4x239xf32>
    %96 = tpu.concatenate %94, %95 in 1 : vector<4x17xf32>, vector<4x239xf32> -> vector<4x256xf32>
    %cst_33 = arith.constant 0.000000e+00 : f32
    %97 = vector.shape_cast %15 : vector<1x256xi1> to vector<1x256xi1>
    %98 = vector.broadcast %97 : vector<1x256xi1> to vector<4x256xi1>
    %99 = vector.broadcast %cst_33 : f32 to vector<4x256xf32>
    %100 = arith.select %98, %96, %99 : vector<4x256xi1>, vector<4x256xf32>
    %c0_34 = arith.constant 0 : index
    %c0_35 = arith.constant 0 : index
    %101 = vector.load %arg5[%c0_34, %c0_35] : memref<36x256xf32, #tpu.memory_space<vmem>>, vector<4x256xf32>
    tpu.vector_store %arg5[%c0_34, %c0_35], %100 {strides = array<i32>} : memref<36x256xf32, #tpu.memory_space<vmem>>, vector<4x256xf32>,
    %102 = vector.extract_strided_slice %93 {offsets = [0, 240], sizes = [4, 16], strides = [1, 1]} : vector<4x256xf32> to vector<4x16xf32>
    %103 = vector.extract_strided_slice %93 {offsets = [0, 0], sizes = [4, 240], strides = [1, 1]} : vector<4x256xf32> to vector<4x240xf32>
    %104 = tpu.concatenate %102, %103 in 1 : vector<4x16xf32>, vector<4x240xf32> -> vector<4x256xf32>
    %cst_36 = arith.constant 0.000000e+00 : f32
    %105 = vector.shape_cast %8 : vector<1x256xi1> to vector<1x256xi1>
    %106 = vector.broadcast %105 : vector<1x256xi1> to vector<4x256xi1>
    %107 = vector.broadcast %cst_36 : f32 to vector<4x256xf32>
    %108 = arith.select %106, %104, %107 : vector<4x256xi1>, vector<4x256xf32>
    %c4_37 = arith.constant 4 : index
    %c0_38 = arith.constant 0 : index
    %109 = vector.load %arg5[%c4_37, %c0_38] : memref<36x256xf32, #tpu.memory_space<vmem>>, vector<4x256xf32>
    tpu.vector_store %arg5[%c4_37, %c0_38], %108 {strides = array<i32>} : memref<36x256xf32, #tpu.memory_space<vmem>>, vector<4x256xf32>,
    %110 = vector.extract_strided_slice %93 {offsets = [0, 241], sizes = [4, 15], strides = [1, 1]} : vector<4x256xf32> to vector<4x15xf32>
    %111 = vector.extract_strided_slice %93 {offsets = [0, 0], sizes = [4, 241], strides = [1, 1]} : vector<4x256xf32> to vector<4x241xf32>
    %112 = tpu.concatenate %110, %111 in 1 : vector<4x15xf32>, vector<4x241xf32> -> vector<4x256xf32>
    %cst_39 = arith.constant 0.000000e+00 : f32
    %113 = vector.shape_cast %16 : vector<1x256xi1> to vector<1x256xi1>
    %114 = vector.broadcast %113 : vector<1x256xi1> to vector<4x256xi1>
    %115 = vector.broadcast %cst_39 : f32 to vector<4x256xf32>
    %116 = arith.select %114, %112, %115 : vector<4x256xi1>, vector<4x256xf32>
    %c8_40 = arith.constant 8 : index
    %c0_41 = arith.constant 0 : index
    %117 = vector.load %arg5[%c8_40, %c0_41] : memref<36x256xf32, #tpu.memory_space<vmem>>, vector<4x256xf32>
    tpu.vector_store %arg5[%c8_40, %c0_41], %116 {strides = array<i32>} : memref<36x256xf32, #tpu.memory_space<vmem>>, vector<4x256xf32>,
    %118 = vector.extract_strided_slice %93 {offsets = [0, 255], sizes = [4, 1], strides = [1, 1]} : vector<4x256xf32> to vector<4x1xf32>
    %119 = vector.extract_strided_slice %93 {offsets = [0, 0], sizes = [4, 255], strides = [1, 1]} : vector<4x256xf32> to vector<4x255xf32>
    %120 = tpu.concatenate %118, %119 in 1 : vector<4x1xf32>, vector<4x255xf32> -> vector<4x256xf32>
    %cst_42 = arith.constant 0.000000e+00 : f32
    %121 = vector.shape_cast %12 : vector<1x256xi1> to vector<1x256xi1>
    %122 = vector.broadcast %121 : vector<1x256xi1> to vector<4x256xi1>
    %123 = vector.broadcast %cst_42 : f32 to vector<4x256xf32>
    %124 = arith.select %122, %120, %123 : vector<4x256xi1>, vector<4x256xf32>
    %c12_43 = arith.constant 12 : index
    %c0_44 = arith.constant 0 : index
    %125 = vector.load %arg5[%c12_43, %c0_44] : memref<36x256xf32, #tpu.memory_space<vmem>>, vector<4x256xf32>
    tpu.vector_store %arg5[%c12_43, %c0_44], %124 {strides = array<i32>} : memref<36x256xf32, #tpu.memory_space<vmem>>, vector<4x256xf32>,
    %c16_45 = arith.constant 16 : index
    %c0_46 = arith.constant 0 : index
    %126 = vector.load %arg5[%c16_45, %c0_46] : memref<36x256xf32, #tpu.memory_space<vmem>>, vector<4x256xf32>
    tpu.vector_store %arg5[%c16_45, %c0_46], %93 {strides = array<i32>} : memref<36x256xf32, #tpu.memory_space<vmem>>, vector<4x256xf32>,
    %127 = vector.extract_strided_slice %93 {offsets = [0, 1], sizes = [4, 255], strides = [1, 1]} : vector<4x256xf32> to vector<4x255xf32>
    %128 = vector.extract_strided_slice %93 {offsets = [0, 0], sizes = [4, 1], strides = [1, 1]} : vector<4x256xf32> to vector<4x1xf32>
    %129 = tpu.concatenate %127, %128 in 1 : vector<4x255xf32>, vector<4x1xf32> -> vector<4x256xf32>
    %cst_47 = arith.constant 0.000000e+00 : f32
    %130 = vector.shape_cast %14 : vector<1x256xi1> to vector<1x256xi1>
    %131 = vector.broadcast %130 : vector<1x256xi1> to vector<4x256xi1>
    %132 = vector.broadcast %cst_47 : f32 to vector<4x256xf32>
    %133 = arith.select %131, %129, %132 : vector<4x256xi1>, vector<4x256xf32>
    %c20_48 = arith.constant 20 : index
    %c0_49 = arith.constant 0 : index
    %134 = vector.load %arg5[%c20_48, %c0_49] : memref<36x256xf32, #tpu.memory_space<vmem>>, vector<4x256xf32>
    tpu.vector_store %arg5[%c20_48, %c0_49], %133 {strides = array<i32>} : memref<36x256xf32, #tpu.memory_space<vmem>>, vector<4x256xf32>,
    %135 = vector.extract_strided_slice %93 {offsets = [0, 15], sizes = [4, 241], strides = [1, 1]} : vector<4x256xf32> to vector<4x241xf32>
    %136 = vector.extract_strided_slice %93 {offsets = [0, 0], sizes = [4, 15], strides = [1, 1]} : vector<4x256xf32> to vector<4x15xf32>
    %137 = tpu.concatenate %135, %136 in 1 : vector<4x241xf32>, vector<4x15xf32> -> vector<4x256xf32>
    %cst_50 = arith.constant 0.000000e+00 : f32
    %138 = vector.shape_cast %17 : vector<1x256xi1> to vector<1x256xi1>
    %139 = vector.broadcast %138 : vector<1x256xi1> to vector<4x256xi1>
    %140 = vector.broadcast %cst_50 : f32 to vector<4x256xf32>
    %141 = arith.select %139, %137, %140 : vector<4x256xi1>, vector<4x256xf32>
    %c24_51 = arith.constant 24 : index
    %c0_52 = arith.constant 0 : index
    %142 = vector.load %arg5[%c24_51, %c0_52] : memref<36x256xf32, #tpu.memory_space<vmem>>, vector<4x256xf32>
    tpu.vector_store %arg5[%c24_51, %c0_52], %141 {strides = array<i32>} : memref<36x256xf32, #tpu.memory_space<vmem>>, vector<4x256xf32>,
    %143 = vector.extract_strided_slice %93 {offsets = [0, 16], sizes = [4, 240], strides = [1, 1]} : vector<4x256xf32> to vector<4x240xf32>
    %144 = vector.extract_strided_slice %93 {offsets = [0, 0], sizes = [4, 16], strides = [1, 1]} : vector<4x256xf32> to vector<4x16xf32>
    %145 = tpu.concatenate %143, %144 in 1 : vector<4x240xf32>, vector<4x16xf32> -> vector<4x256xf32>
    %cst_53 = arith.constant 0.000000e+00 : f32
    %146 = vector.shape_cast %10 : vector<1x256xi1> to vector<1x256xi1>
    %147 = vector.broadcast %146 : vector<1x256xi1> to vector<4x256xi1>
    %148 = vector.broadcast %cst_53 : f32 to vector<4x256xf32>
    %149 = arith.select %147, %145, %148 : vector<4x256xi1>, vector<4x256xf32>
    %c28_54 = arith.constant 28 : index
    %c0_55 = arith.constant 0 : index
    %150 = vector.load %arg5[%c28_54, %c0_55] : memref<36x256xf32, #tpu.memory_space<vmem>>, vector<4x256xf32>
    tpu.vector_store %arg5[%c28_54, %c0_55], %149 {strides = array<i32>} : memref<36x256xf32, #tpu.memory_space<vmem>>, vector<4x256xf32>,
    %151 = vector.extract_strided_slice %93 {offsets = [0, 17], sizes = [4, 239], strides = [1, 1]} : vector<4x256xf32> to vector<4x239xf32>
    %152 = vector.extract_strided_slice %93 {offsets = [0, 0], sizes = [4, 17], strides = [1, 1]} : vector<4x256xf32> to vector<4x17xf32>
    %153 = tpu.concatenate %151, %152 in 1 : vector<4x239xf32>, vector<4x17xf32> -> vector<4x256xf32>
    %cst_56 = arith.constant 0.000000e+00 : f32
    %154 = vector.shape_cast %18 : vector<1x256xi1> to vector<1x256xi1>
    %155 = vector.broadcast %154 : vector<1x256xi1> to vector<4x256xi1>
    %156 = vector.broadcast %cst_56 : f32 to vector<4x256xf32>
    %157 = arith.select %155, %153, %156 : vector<4x256xi1>, vector<4x256xf32>
    %c32_57 = arith.constant 32 : index
    %c0_58 = arith.constant 0 : index
    %158 = vector.load %arg5[%c32_57, %c0_58] : memref<36x256xf32, #tpu.memory_space<vmem>>, vector<4x256xf32>
    tpu.vector_store %arg5[%c32_57, %c0_58], %157 {strides = array<i32>} : memref<36x256xf32, #tpu.memory_space<vmem>>, vector<4x256xf32>,
    %c0_59 = arith.constant 0 : index
    %c0_60 = arith.constant 0 : index
    %159 = vector.load %arg5[%c0_59, %c0_60] : memref<36x256xf32, #tpu.memory_space<vmem>>, vector<36x256xf32>
    %cst_61 = arith.constant dense<0.000000e+00> : vector<8x256xf32>
    %160 = tpu.matmul %0, %159, %cst_61 {dimension_numbers = #tpu.dot_dimension_numbers<[1], [0], [0], [1], [0, 0, 1, 1], [], []>} : vector<8x36xf32>, vector<36x256xf32>, vector<8x256xf32> -> vector<8x256xf32>
    %161 = arith.addf %160, %1 : vector<8x256xf32>
    %c1_62 = arith.constant 1 : index
    %c0_63 = arith.constant 0 : index
    %c0_64 = arith.constant 0 : index
    %162 = vector.load %arg4[%c1_62, %c0_63, %c0_64] : memref<2x8x256xf32, #tpu.memory_space<vmem>>, vector<1x8x256xf32>
    %163 = vector.shape_cast %162 : vector<1x8x256xf32> to vector<8x256xf32>
    %164 = vector.shape_cast %161 : vector<8x256xf32> to vector<1x8x256xf32>
    tpu.vector_store %arg4[%c1_62, %c0_63, %c0_64], %164 {strides = array<i32>} : memref<2x8x256xf32, #tpu.memory_space<vmem>>, vector<1x8x256xf32>,
    return
  }
  func.func @transform_0(%arg0: i32) -> (i32, i32, i32) {
    %c0_i32 = arith.constant 0 : i32
    %c0_i32_0 = arith.constant 0 : i32
    %c0_i32_1 = arith.constant 0 : i32
    return %arg0, %c0_i32, %c0_i32_0 : i32, i32, i32
  }
  func.func @transform_1(%arg0: i32) -> (i32, i32) {
    %c0_i32 = arith.constant 0 : i32
    %c0_i32_0 = arith.constant 0 : i32
    %c0_i32_1 = arith.constant 0 : i32
    return %c0_i32, %c0_i32_0 : i32, i32
  }
  func.func @transform_2(%arg0: i32) -> (i32, i32) {
    %c0_i32 = arith.constant 0 : i32
    %c0_i32_0 = arith.constant 0 : i32
    %c0_i32_1 = arith.constant 0 : i32
    return %c0_i32, %c0_i32_0 : i32, i32
  }
  func.func @transform_3(%arg0: i32) -> (i32, i32, i32) {
    %c0_i32 = arith.constant 0 : i32
    %c0_i32_0 = arith.constant 0 : i32
    %c0_i32_1 = arith.constant 0 : i32
    return %arg0, %c0_i32, %c0_i32_0 : i32, i32, i32
  }
}

</mosaic_0001>

<bundles_post_ra>
// kernel: tpu_custom_call.1
= control target key start
LH: loop header
LB: loop body
LE: loop exit
PB: predicated region body
PF: predicated region fallthrough
CT: control target
= control target key end

     0   :  { %8 = vsyncpa [#allocation4], 0  ;;  %s1154_s0 = inlined_call_operand.hbm [shape: f32[2,4,256], index: 0, kind: input, shape index: {}]   ;;  %s1155_s1 = inlined_call_operand.hbm [shape: f32[8,36], index: 1, kind: input, shape index: {}]   ;;  %s1156_s2 = inlined_call_operand.hbm [shape: f32[8,256], index: 2, kind: input, shape index: {}]   ;;  %s1157_s3 = inlined_call_operand.hbm [shape: f32[2,8,256], index: 3, kind: output, shape index: {}]  }
   0x1   :  { %9 = vsyncpa [#allocation7], 0  ;;  %s29_s14 = sshll.u32 %s1155_s1, 4  ;;  %s30_s14 = int_to_ptr.hbm [resolvable:$true] %s29_s14 }
   0x2   :  { %10 = vsyncpa [#allocation5], 0  ;;  %s778_s15 = smov [#allocation6]   ;;  %s15_s19 = sshll.u32 %s1154_s0, 4  ;;  %s16_s19 = int_to_ptr.hbm [resolvable:$true] %s15_s19 }
   0x3   :  { %s31_s16 = sshll.u32 %s778_s15, 4  ;;  %s779_s20 = smov [#allocation3]   ;;  %s32_s16 = int_to_ptr.vmem [resolvable:$true] %s31_s16 }
   0x4   :  { %34 = dma.hbm_to_vmem [thread:$0]  %s30_s14, 128, %s32_s16, [#allocation7]  }
   0x5   :  { %s17_s21 = sshll.u32 %s779_s20, 4  ;;  %s780_s22 = smov 128   ;;  %s18_s21 = int_to_ptr.vmem [resolvable:$true] %s17_s21 }
   0x6   :  { %s781_s23 = smov 8   ;;  %s40_s1 = sshll.u32 %s1156_s2, 4  ;;  %s41_s1 = int_to_ptr.hbm [resolvable:$true] %s40_s1 }
   0x7   :  { %23 = dma.hbm_to_vmem [thread:$0]  %s16_s19, 256, %s18_s21, [#allocation4], %s780_s22, %s780_s22, %s781_s23  }
   0x8   :  { %s782_s26 = smov [#allocation8]  }
   0x9   :  { %s42_s27 = sshll.u32 %s782_s26, 4  ;;  %s43_s27 = int_to_ptr.vmem [resolvable:$true] %s42_s27 }
   0xa   :  { %45 = dma.hbm_to_vmem [thread:$0]  %s41_s1, 256, %s43_s27, [#allocation7]  }
   0xb   :  { %772 = dma.done.wait [#allocation4], 256  }
   0xc   :  { %773 = vsyncadd [#allocation4], 4294967040 }
   0xd   :  { %774 = dma.done.wait [#allocation7], 384  }
   0xe   :  { %775 = vsyncadd [#allocation7], 4294966912  ;;  %v822_v0 = vld [vmem:[#allocation3] sm:$0xff]  ;;  %s783_s0 = smov 17   ;;  %s784_s2 = smov 16   ;;  %v61_v24 = vlaneseq  ;;  %vm1160_vm5 = vcmask 138240  }
   0xf   :  { %86 = vst [vmem:[#allocation1] ss:$2 sm:$0xff] %v822_v0  ;;  %s785_s28 = smov 15   ;;  %s786_s29 = smov 1   ;;  %v913_v44 = vld [vmem:[#allocation3 + $0x8] sm:$0xff]  ;;  %vm123_vm7 = vcmask 130048  }
  0x10   :  { %s787_s30 = smov 127   ;;  %s788_s4 = smov 113   ;;  %v861_v25 = vand.u32 127, %v61_v24  ;;  %vm154_vm11 = vcmask 121856   ;;  %vm1165_vm13 = vcmask 7168   ;;  %vm1161_vm14 = vcmask 1039360  }
  0x11   :  { %s789_s5 = smov 112   ;;  %s790_s6 = smov 111  }
  0x12   :  { %v864_v26 = vadd.s32 128, %v861_v25  ;;  %v64_v27 = vand.u32 15, %v861_v25  ;;  %v66_v28 = vshra.s32 %v861_v25, 4  ;;  %s791_s7 = smov [#allocation9]   ;;  %s639_s11 = sshll.u32 %s1157_s3, 4  ;;  %s640_s11 = int_to_ptr.hbm [resolvable:$true] %s639_s11 }
  0x13   :  { %s637_s8 = sshll.u32 %s791_s7, 4  ;;  %s792_s12 = smov 256   ;;  %s638_s8 = int_to_ptr.vmem [resolvable:$true] %s637_s8 }
  0x14   :  { %v65_v29 = vand.u32 15, %v864_v26  ;;  %v67_v30 = vshra.s32 %v864_v26, 4  ;;  %vm872_vm0 = vcmp.ge.s32.totalorder %v66_v28, 1  ;;  %vm876_vm1 = vcmp.ge.s32.totalorder %v64_v27, 1 }
  0x15   :  { %vm1159_vm4 = vmand %vm872_vm0, %vm876_vm1  ;;  %vm931_vm8 = vcmp.le.s32.totalorder %v64_v27, 14  ;;  %vm988_vm15 = vcmp.le.s32.totalorder %v66_v28, 14 }
  0x16   :  { %v87_v1 = vld.sshfl [vmem:[#allocation1 + $0x8] sm:$0xff pattern:$0x75316420]  ;;  %vm885_vm2 = vcmp.ge.s32.totalorder %v67_v30, 1  ;;  %vm889_vm3 = vcmp.ge.s32.totalorder %v65_v29, 1  ;;  %vm937_vm9 = vcmp.le.s32.totalorder %v65_v29, 14  ;;  %vm78_vm10 = vmand %vm872_vm0, %vm931_vm8 }
  0x17   :  { %88 = vrot.lane.b32.xlu0 %v87_v1, %s783_s0  ;;  %91 = vst [vmem:[#allocation1] ss:$2 sm:$0xff] %v822_v0  ;;  %vm1158_vm6 = vmand %vm885_vm2, %vm889_vm3 }
  0x18   :  { %vm79_vm12 = vmand %vm885_vm2, %vm937_vm9 }
  0x1e   :  { %v92_v2 = vld.sshfl [vmem:[#allocation1] sm:$0xff pattern:$0x75316420]  ;;  %v93_v3 = vld.sshfl [vmem:[#allocation1 + $0x8] sm:$0xff pattern:$0x75316420] }
  0x1f   :  { %94 = vrot.lane.b32.xlu1 %v92_v2, %s783_s0  ;;  %111 = vst [vmem:[#allocation1] ss:$2 sm:$0xff] %v822_v0  ;;  %96 = vrot.lane.b32.xlu2 %v93_v3, %s783_s0 }
  0x26   :  { %v112_v4 = vld.sshfl [vmem:[#allocation1 + $0x8] sm:$0xff pattern:$0x75316420] }
  0x27   :  { %113 = vrot.lane.b32.xlu0 %v112_v4, %s784_s2  ;;  %116 = vst [vmem:[#allocation1] ss:$2 sm:$0xff] %v822_v0 }
  0x2e   :  { %v117_v5 = vld.sshfl [vmem:[#allocation1] sm:$0xff pattern:$0x75316420]  ;;  %v118_v6 = vld.sshfl [vmem:[#allocation1 + $0x8] sm:$0xff pattern:$0x75316420] }
  0x2f   :  { %119 = vrot.lane.b32.xlu1 %v117_v5, %s784_s2  ;;  %142 = vst [vmem:[#allocation1] ss:$2 sm:$0xff] %v822_v0  ;;  %121 = vrot.lane.b32.xlu2 %v118_v6, %s784_s2 }
  0x36   :  { %v143_v7 = vld.sshfl [vmem:[#allocation1 + $0x8] sm:$0xff pattern:$0x75316420] }
  0x37   :  { %144 = vrot.lane.b32.xlu0 %v143_v7, %s785_s28  ;;  %147 = vst [vmem:[#allocation1] ss:$2 sm:$0xff] %v822_v0 }
  0x3e   :  { %v148_v8 = vld.sshfl [vmem:[#allocation1] sm:$0xff pattern:$0x75316420]  ;;  %v149_v9 = vld.sshfl [vmem:[#allocation1 + $0x8] sm:$0xff pattern:$0x75316420] }
  0x3f   :  { %150 = vrot.lane.b32.xlu1 %v148_v8, %s785_s28  ;;  %167 = vst [vmem:[#allocation1] ss:$2 sm:$0xff] %v822_v0  ;;  %152 = vrot.lane.b32.xlu2 %v149_v9, %s785_s28 }
  0x46   :  { %v168_v10 = vld.sshfl [vmem:[#allocation1 + $0x8] sm:$0xff pattern:$0x75316420] }
  0x47   :  { %169 = vrot.lane.b32.xlu0 %v168_v10, %s786_s29  ;;  %172 = vst [vmem:[#allocation1] ss:$2 sm:$0xff] %v822_v0 }
  0x4e   :  { %v173_v11 = vld.sshfl [vmem:[#allocation1] sm:$0xff pattern:$0x75316420]  ;;  %v174_v12 = vld.sshfl [vmem:[#allocation1 + $0x8] sm:$0xff pattern:$0x75316420] }
  0x4f   :  { %175 = vrot.lane.b32.xlu1 %v173_v11, %s786_s29  ;;  %198 = vst [vmem:[#allocation1] ss:$2 sm:$0xff] %v822_v0  ;;  %177 = vrot.lane.b32.xlu2 %v174_v12, %s786_s29 }
  0x56   :  { %v199_v13 = vld.sshfl [vmem:[#allocation1] sm:$0xff pattern:$0x75316420]  ;;  %v200_v14 = vld.sshfl [vmem:[#allocation1 + $0x8] sm:$0xff pattern:$0x75316420] }
  0x57   :  { %205 = vst [vmem:[#allocation1] ss:$2 sm:$0xff] %v822_v0 }
  0x58   :  { %203 = vst [vmem:[#allocation2 + $0x48] sm:$0xf] %v199_v13 }
  0x59   :  { %204 = vst [vmem:[#allocation2 + $0x28] sm:$0xf] %v200_v14 }
  0x5e   :  { %v207_v15 = vld.sshfl [vmem:[#allocation1 + $0x8] sm:$0xff pattern:$0x75316420]  ;;  %v206_v16 = vld.sshfl [vmem:[#allocation1] sm:$0xff pattern:$0x75316420] }
  0x5f   :  { %210 = vrot.lane.b32.xlu1 %v207_v15, %s787_s30  ;;  %208 = vrot.lane.b32.xlu0 %v206_v16, %s787_s30  ;;  %216 = vst [vmem:[#allocation1] ss:$2 sm:$0xff] %v822_v0 }
  0x66   :  { %v217_v17 = vld.sshfl [vmem:[#allocation1] sm:$0xff pattern:$0x75316420] }
  0x67   :  { %236 = vst [vmem:[#allocation1] ss:$2 sm:$0xff] %v822_v0  ;;  %218 = vrot.lane.b32.xlu2 %v217_v17, %s787_s30 }
  0x6e   :  { %v238_v18 = vld.sshfl [vmem:[#allocation1 + $0x8] sm:$0xff pattern:$0x75316420]  ;;  %v237_v19 = vld.sshfl [vmem:[#allocation1] sm:$0xff pattern:$0x75316420] }
  0x6f   :  { %241 = vrot.lane.b32.xlu1 %v238_v18, %s788_s4  ;;  %239 = vrot.lane.b32.xlu0 %v237_v19, %s788_s4  ;;  %247 = vst [vmem:[#allocation1] ss:$2 sm:$0xff] %v822_v0 }
  0x76   :  { %v248_v20 = vld.sshfl [vmem:[#allocation1] sm:$0xff pattern:$0x75316420] }
  0x77   :  { %261 = vst [vmem:[#allocation1] ss:$2 sm:$0xff] %v822_v0  ;;  %249 = vrot.lane.b32.xlu2 %v248_v20, %s788_s4 }
  0x79   :  { %v97_v37 = vpop.permute.xlu2 %96 }
  0x7e   :  { %v262_v21 = vld.sshfl [vmem:[#allocation1] sm:$0xff pattern:$0x75316420]  ;;  %v263_v22 = vld.sshfl [vmem:[#allocation1 + $0x8] sm:$0xff pattern:$0x75316420] }
  0x7f   :  { %264 = vrot.lane.b32.xlu0 %v262_v21, %s789_s5  ;;  %272 = vst [vmem:[#allocation1] ss:$2 sm:$0xff] %v822_v0 }
  0x86   :  { %v273_v23 = vld.sshfl [vmem:[#allocation1] sm:$0xff pattern:$0x75316420] }
  0x87   :  { %274 = vrot.lane.b32.xlu1 %v273_v23, %s789_s5  ;;  %292 = vst [vmem:[#allocation1] ss:$2 sm:$0xff] %v822_v0  ;;  %266 = vrot.lane.b32.xlu0 %v263_v22, %s789_s5 }
  0x89   :  { %v89_v38 = vpop.permute.xlu0 %88  ;;  %v122_v47 = vpop.permute.xlu2 %121 }
  0x8e   :  { %v293_v33 = vld.sshfl [vmem:[#allocation1] sm:$0xff pattern:$0x75316420]  ;;  %v294_v34 = vld.sshfl [vmem:[#allocation1 + $0x8] sm:$0xff pattern:$0x75316420] }
  0x8f   :  { %295 = vrot.lane.b32.xlu1 %v293_v33, %s790_s6  ;;  %297 = vrot.lane.b32.xlu2 %v294_v34, %s790_s6  ;;  %303 = vst [vmem:[#allocation1] ss:$2 sm:$0xff] %v822_v0 }
  0x91   :  { %v95_v39 = vpop.permute.xlu1 %94 }
  0x92   :  { %v99_v40 = vsel %vm1160_vm5, %v95_v39, %v97_v37  ;;  %v102_v41 = vsel %vm1160_vm5, %v89_v38, %v95_v39  ;;  %vm999_vm5 = vcmp.le.s32.totalorder %v67_v30, 14 }
  0x93   :  { %v107_v42 = vsel %vm1159_vm4, %v102_v41, 0.0  ;;  %v108_v43 = vsel %vm1158_vm6, %v99_v40, 0.0  ;;  %vm1162_vm6 = vmand %vm988_vm15, %vm876_vm1  ;;  %vm1164_vm4 = vcmask 924672  }
  0x94   :  { %109 = vst [vmem:[#allocation2 + $0x30] sm:$0xf] %v107_v42 }
  0x95   :  { %110 = vst [vmem:[#allocation2] sm:$0xf] %v108_v43 }
  0x96   :  { %v304_v45 = vld.sshfl [vmem:[#allocation1] sm:$0xff pattern:$0x75316420] }
  0x97   :  { %305 = vrot.lane.b32.xlu2 %v304_v45, %s790_s6  ;;  %383 = vst [vmem:[#allocation1] ss:$2 sm:$0xff] %v913_v44 }
  0x99   :  { %v114_v48 = vpop.permute.xlu0 %113  ;;  %v153_v61 = vpop.permute.xlu2 %152 }
  0x9e   :  { %v917_v46 = vld.sshfl [vmem:[#allocation1 + $0x8] sm:$0xff pattern:$0x75316420] }
  0x9f   :  { %388 = vst [vmem:[#allocation1] ss:$2 sm:$0xff] %v913_v44 }
  0xa1   :  { %v120_v49 = vpop.permute.xlu1 %119 }
  0xa2   :  { %v124_v50 = vsel %vm123_vm7, %v120_v49, %v122_v47  ;;  %v127_v51 = vsel %vm123_vm7, %v114_v48, %v120_v49 }
  0xa3   :  { %v132_v52 = vsel %vm872_vm0, %v127_v51, 0.0  ;;  %v133_v53 = vsel %vm885_vm2, %v124_v50, 0.0 }
  0xa4   :  { %v136_v54 = vrot.slane %v132_v52, 4  ;;  %v137_v55 = vrot.slane %v133_v53, 4 }
  0xa6   :  { %v926_v56 = vld.sshfl [vmem:[#allocation1] sm:$0xff pattern:$0x75316420]  ;;  %v928_v57 = vld.sshfl [vmem:[#allocation1 + $0x8] sm:$0xff pattern:$0x75316420] }
  0xa7   :  { %403 = vst [vmem:[#allocation1] ss:$2 sm:$0xff] %v913_v44 }
  0xa8   :  { %140 = vst [vmem:[#allocation2 + $0x30] sm:$0xf0] %v136_v54 }
  0xa9   :  { %141 = vst [vmem:[#allocation2] sm:$0xf0] %v137_v55  ;;  %v145_v62 = vpop.permute.xlu0 %144  ;;  %v178_v7 = vpop.permute.xlu2 %177 }
  0xae   :  { %v404_v58 = vld.sshfl [vmem:[#allocation1 + $0x8] sm:$0xff pattern:$0x75316420] }
  0xaf   :  { %405 = vrot.lane.b32.xlu0 %v404_v58, %s784_s2  ;;  %408 = vst [vmem:[#allocation1] ss:$2 sm:$0xff] %v913_v44 }
  0xb1   :  { %v151_v63 = vpop.permute.xlu1 %150 }
  0xb2   :  { %v155_v0 = vsel %vm154_vm11, %v151_v63, %v153_v61  ;;  %v158_v1 = vsel %vm154_vm11, %v145_v62, %v151_v63 }
  0xb3   :  { %v163_v2 = vsel %vm78_vm10, %v158_v1, 0.0  ;;  %v164_v3 = vsel %vm79_vm12, %v155_v0, 0.0 }
  0xb4   :  { %165 = vst [vmem:[#allocation2 + $0x18] sm:$0xf] %v163_v2 }
  0xb5   :  { %166 = vst [vmem:[#allocation2 + $0x10] sm:$0xf] %v164_v3 }
  0xb6   :  { %v409_v4 = vld.sshfl [vmem:[#allocation1] sm:$0xff pattern:$0x75316420]  ;;  %v410_v5 = vld.sshfl [vmem:[#allocation1 + $0x8] sm:$0xff pattern:$0x75316420] }
  0xb7   :  { %411 = vrot.lane.b32.xlu1 %v409_v4, %s784_s2  ;;  %429 = vst [vmem:[#allocation1] ss:$2 sm:$0xff] %v913_v44  ;;  %413 = vrot.lane.b32.xlu2 %v410_v5, %s784_s2 }
  0xb9   :  { %v170_v8 = vpop.permute.xlu0 %169 }
  0xbe   :  { %v430_v6 = vld.sshfl [vmem:[#allocation1 + $0x8] sm:$0xff pattern:$0x75316420] }
  0xbf   :  { %431 = vrot.lane.b32.xlu0 %v430_v6, %s785_s28  ;;  %434 = vst [vmem:[#allocation1] ss:$2 sm:$0xff] %v913_v44 }
  0xc1   :  { %v176_v9 = vpop.permute.xlu1 %175  ;;  %v219_v19 = vpop.permute.xlu2 %218 }
  0xc2   :  { %v180_v10 = vsel %vm1165_vm13, %v176_v9, %v178_v7  ;;  %v183_v11 = vsel %vm1165_vm13, %v170_v8, %v176_v9  ;;  %vm331_vm13 = vcmask 1043456  }
  0xc3   :  { %v188_v12 = vsel %vm876_vm1, %v183_v11, 0.0  ;;  %v189_v13 = vsel %vm889_vm3, %v180_v10, 0.0 }
  0xc4   :  { %v192_v14 = vrot.slane %v188_v12, 4  ;;  %v193_v15 = vrot.slane %v189_v13, 4 }
  0xc6   :  { %v435_v16 = vld.sshfl [vmem:[#allocation1] sm:$0xff pattern:$0x75316420]  ;;  %v436_v17 = vld.sshfl [vmem:[#allocation1 + $0x8] sm:$0xff pattern:$0x75316420] }
  0xc7   :  { %437 = vrot.lane.b32.xlu1 %v435_v16, %s785_s28  ;;  %449 = vst [vmem:[#allocation1] ss:$2 sm:$0xff] %v913_v44  ;;  %439 = vrot.lane.b32.xlu2 %v436_v17, %s785_s28 }
  0xc8   :  { %196 = vst [vmem:[#allocation2 + $0x18] sm:$0xf0] %v192_v14 }
  0xc9   :  { %197 = vst [vmem:[#allocation2 + $0x10] sm:$0xf0] %v193_v15 }
  0xce   :  { %v450_v18 = vld.sshfl [vmem:[#allocation1 + $0x8] sm:$0xff pattern:$0x75316420] }
  0xcf   :  { %451 = vrot.lane.b32.xlu0 %v450_v18, %s786_s29  ;;  %454 = vst [vmem:[#allocation1] ss:$2 sm:$0xff] %v913_v44  ;;  %v318_v18 = vld [vmem:[#allocation2] sm:$0xff] }
  0xd0   :  { %v320_v15 = vld [vmem:[#allocation2 + $0x10] sm:$0xff] }
  0xd1   :  { %v211_v20 = vpop.permute.xlu1 %210  ;;  %v209_v21 = vpop.permute.xlu0 %208 }
  0xd2   :  { %v213_v22 = vsel %vm1161_vm14, %v209_v21, %v211_v20  ;;  %v221_v23 = vsel %vm1161_vm14, %v211_v20, %v219_v19  ;;  %v250_v25 = vpop.permute.xlu2 %249  ;;  %vm1163_vm14 = vmand %vm999_vm5, %vm889_vm3  ;;  %v319_v20 = vld [vmem:[#allocation2 + $0x18] sm:$0xff]  ;;  %v317_v21 = vld [vmem:[#allocation2 + $0x30] sm:$0xff] }
  0xd3   :  { %v226_v24 = vsel %vm931_vm8, %v213_v22, 0.0  ;;  %v227_v27 = vsel %vm937_vm9, %v221_v23, 0.0 }
  0xd4   :  { %v230_v29 = vrot.slane %v226_v24, 4  ;;  %v231_v33 = vrot.slane %v227_v27, 4 }
  0xd6   :  { %v455_v34 = vld.sshfl [vmem:[#allocation1] sm:$0xff pattern:$0x75316420]  ;;  %v456_v37 = vld.sshfl [vmem:[#allocation1 + $0x8] sm:$0xff pattern:$0x75316420] }
  0xd7   :  { %457 = vrot.lane.b32.xlu1 %v455_v34, %s786_s29  ;;  %475 = vst [vmem:[#allocation1] ss:$2 sm:$0xff] %v913_v44  ;;  %459 = vrot.lane.b32.xlu2 %v456_v37, %s786_s29 }
  0xd8   :  { %234 = vst [vmem:[#allocation2 + $0x48] sm:$0xf0] %v230_v29 }
  0xd9   :  { %235 = vst [vmem:[#allocation2 + $0x28] sm:$0xf0] %v231_v33 }
  0xde   :  { %v476_v39 = vld.sshfl [vmem:[#allocation1] sm:$0xff pattern:$0x75316420]  ;;  %v477_v40 = vld.sshfl [vmem:[#allocation1 + $0x8] sm:$0xff pattern:$0x75316420] }
  0xdf   :  { %482 = vst [vmem:[#allocation1] ss:$2 sm:$0xff] %v913_v44  ;;  %v321_v7 = vld [vmem:[#allocation2 + $0x48] sm:$0xff] }
  0xe0   :  { %480 = vst [vmem:[#allocation2 + $0x48] sm:$0xf] %v476_v39  ;;  %v322_v9 = vld [vmem:[#allocation2 + $0x28] sm:$0xff] }
  0xe1   :  { %v242_v28 = vpop.permute.xlu1 %241  ;;  %v240_v42 = vpop.permute.xlu0 %239  ;;  %481 = vst [vmem:[#allocation2 + $0x28] sm:$0xf] %v477_v40 }
  0xe2   :  { %v244_v43 = vsel %vm1164_vm4, %v240_v42, %v242_v28  ;;  %v252_v45 = vsel %vm1164_vm4, %v242_v28, %v250_v25  ;;  %vm268_vm4 = vcmask 916480  }
  0xe3   :  { %v257_v26 = vsel %vm1162_vm6, %v244_v43, 0.0  ;;  %v258_v30 = vsel %vm1163_vm14, %v252_v45, 0.0  ;;  %vm299_vm6 = vcmask 908288   ;;  %vm1166_vm14 = vmand %vm999_vm5, %vm937_vm9 }
  0xe4   :  { %259 = vst [vmem:[#allocation2 + $0x8] sm:$0xf] %v257_v26 }
  0xe5   :  { %260 = vst [vmem:[#allocation2 + $0x20] sm:$0xf] %v258_v30 }
  0xe6   :  { %v484_v47 = vld.sshfl [vmem:[#allocation1 + $0x8] sm:$0xff pattern:$0x75316420]  ;;  %v483_v48 = vld.sshfl [vmem:[#allocation1] sm:$0xff pattern:$0x75316420] }
  0xe7   :  { %487 = vrot.lane.b32.xlu1 %v484_v47, %s787_s30  ;;  %485 = vrot.lane.b32.xlu0 %v483_v48, %s787_s30  ;;  %492 = vst [vmem:[#allocation1] ss:$2 sm:$0xff] %v913_v44 }
  0xe9   :  { %v298_v49 = vpop.permute.xlu2 %297 }
  0xee   :  { %v493_v50 = vld.sshfl [vmem:[#allocation1] sm:$0xff pattern:$0x75316420] }
  0xef   :  { %508 = vst [vmem:[#allocation1] ss:$2 sm:$0xff] %v913_v44  ;;  %494 = vrot.lane.b32.xlu2 %v493_v50, %s787_s30 }
  0xf1   :  { %v265_v51 = vpop.permute.xlu0 %264  ;;  %v306_v52 = vpop.permute.xlu2 %305 }
  0xf2   :  { %v308_v53 = vsel %vm299_vm6, %v298_v49, %v306_v52 }
  0xf3   :  { %v314_v54 = vsel %vm1166_vm14, %v308_v53, 0.0  ;;  %vm82_vm14 = vmand %vm988_vm15, %vm931_vm8 }
  0xf4   :  { %316 = vst [vmem:[#allocation2 + $0x38] sm:$0xf] %v314_v54 }
  0xf6   :  { %v510_v55 = vld.sshfl [vmem:[#allocation1 + $0x8] sm:$0xff pattern:$0x75316420]  ;;  %v509_v58 = vld.sshfl [vmem:[#allocation1] sm:$0xff pattern:$0x75316420] }
  0xf7   :  { %513 = vrot.lane.b32.xlu1 %v510_v55, %s788_s4  ;;  %511 = vrot.lane.b32.xlu0 %v509_v58, %s788_s4  ;;  %518 = vst [vmem:[#allocation1] ss:$2 sm:$0xff] %v913_v44 }
  0xf9   :  { %v275_v61 = vpop.permute.xlu1 %274  ;;  %v267_v62 = vpop.permute.xlu0 %266 }
  0xfa   :  { %v269_v63 = vsel %vm268_vm4, %v265_v51, %v267_v62  ;;  %v277_v0 = vsel %vm268_vm4, %v267_v62, %v275_v61 }
  0xfb   :  { %v282_v1 = vsel %vm988_vm15, %v269_v63, 0.0  ;;  %v283_v2 = vsel %vm999_vm5, %v277_v0, 0.0  ;;  %v326_v3 = vld [vmem:[#allocation2 + $0x38] sm:$0xf] }
  0xfc   :  { %v286_v4 = vrot.slane %v282_v1, 4  ;;  %v287_v5 = vrot.slane %v283_v2, 4  ;;  %655 = vmatpush.msk.msra.mxu1 %vm331_vm13, %v326_v3 }
  0xfe   :  { %v519_v6 = vld.sshfl [vmem:[#allocation1] sm:$0xff pattern:$0x75316420]  ;;  %290 = vst [vmem:[#allocation2 + $0x8] sm:$0xf0] %v286_v4 }
  0xff   :  { %528 = vst [vmem:[#allocation1] ss:$2 sm:$0xff] %v913_v44  ;;  %520 = vrot.lane.b32.xlu2 %v519_v6, %s788_s4 }
 0x100   :  { %291 = vst [vmem:[#allocation2 + $0x20] sm:$0xf0] %v287_v5 }
 0x101   :  { %v296_v8 = vpop.permute.xlu1 %295 }
 0x102   :  { %v300_v10 = vsel %vm299_vm6, %v296_v8, %v298_v49 }
 0x103   :  { %v313_v11 = vsel %vm82_vm14, %v300_v10, 0.0 }
 0x104   :  { %315 = vst [vmem:[#allocation2 + $0x40] sm:$0xf] %v313_v11 }
 0x105   :  { %v323_v17 = vld [vmem:[#allocation2 + $0x8] sm:$0xff] }
 0x106   :  { %v530_v12 = vld.sshfl [vmem:[#allocation1 + $0x8] sm:$0xff pattern:$0x75316420]  ;;  %v529_v13 = vld.sshfl [vmem:[#allocation1] sm:$0xff pattern:$0x75316420] }
 0x107   :  { %533 = vrot.lane.b32.xlu1 %v530_v12, %s789_s5  ;;  %531 = vrot.lane.b32.xlu0 %v529_v13, %s789_s5  ;;  %538 = vst [vmem:[#allocation1] ss:$2 sm:$0xff] %v913_v44  ;;  %v324_v14 = vld [vmem:[#allocation2 + $0x20] sm:$0xff] }
 0x108   :  { %370 = vmatpush.msra.mxu1 %v324_v14 }
 0x10a   :  { %371 = vmatpush.msra.mxu1 %v322_v9 }
 0x10b   :  { %v325_v16 = vld [vmem:[#allocation2 + $0x40] sm:$0xf] }
 0x10c   :  { %653 = vmatpush.msk.msra.mxu0 %vm331_vm13, %v325_v16  ;;  %372 = vmatpush.msra.mxu1 %v320_v15 }
 0x10e   :  { %v539_v19 = vld.sshfl [vmem:[#allocation1] sm:$0xff pattern:$0x75316420]  ;;  %350 = vmatpush.msra.mxu0 %v323_v17  ;;  %373 = vmatpush.msra.mxu1 %v318_v18 }
 0x10f   :  { %554 = vst [vmem:[#allocation1] ss:$2 sm:$0xff] %v913_v44  ;;  %540 = vrot.lane.b32.xlu2 %v539_v19, %s789_s5  ;;  %v58_v19 = vld [vmem:[#allocation6] sm:$0xff] }
 0x110   :  { %351 = vmatpush.msra.mxu0 %v321_v7 }
 0x111   :  { %v414_v27 = vpop.permute.xlu2 %413 }
 0x112   :  { %352 = vmatpush.msra.mxu0 %v319_v20 }
 0x114   :  { %353 = vmatpush.msra.mxu0 %v317_v21 }
 0x116   :  { %v556_v22 = vld.sshfl [vmem:[#allocation1 + $0x8] sm:$0xff pattern:$0x75316420]  ;;  %v555_v23 = vld.sshfl [vmem:[#allocation1] sm:$0xff pattern:$0x75316420] }
 0x117   :  { %559 = vrot.lane.b32.xlu1 %v556_v22, %s790_s6  ;;  %557 = vrot.lane.b32.xlu0 %v555_v23, %s790_s6  ;;  %564 = vst [vmem:[#allocation1] ss:$2 sm:$0xff] %v913_v44 }
 0x11e   :  { %v565_v24 = vld.sshfl [vmem:[#allocation1] sm:$0xff pattern:$0x75316420] }
 0x11f   :  { %391 = vrot.lane.b32.xlu1 %v926_v56, %s783_s0  ;;  %385 = vrot.lane.b32.xlu0 %v917_v46, %s783_s0 }
 0x120   :  { %566 = vrot.lane.b32.xlu2 %v565_v24, %s790_s6 }
 0x121   :  { %v406_v29 = vpop.permute.xlu0 %405  ;;  %v440_v40 = vpop.permute.xlu2 %439 }
 0x128   :  { %393 = vrot.lane.b32.xlu2 %v928_v57, %s783_s0 }
 0x129   :  { %v412_v33 = vpop.permute.xlu1 %411 }
 0x12a   :  { %v415_v34 = vsel %vm123_vm7, %v412_v33, %v414_v27  ;;  %v418_v37 = vsel %vm123_vm7, %v406_v29, %v412_v33  ;;  %vm1183_vm7 = vcmask 7168  }
 0x12b   :  { %v419_v44 = vsel %vm872_vm0, %v418_v37, 0.0  ;;  %v420_v56 = vsel %vm885_vm2, %v415_v34, 0.0 }
 0x12c   :  { %v423_v39 = vrot.slane %v419_v44, 4  ;;  %v424_v46 = vrot.slane %v420_v56, 4 }
 0x12e   :  { %427 = vst [vmem:[#allocation2 + $0x30] sm:$0xf0] %v423_v39 }
 0x12f   :  { %428 = vst [vmem:[#allocation2] sm:$0xf0] %v424_v46 }
 0x131   :  { %v432_v25 = vpop.permute.xlu0 %431  ;;  %v460_v30 = vpop.permute.xlu2 %459 }
 0x139   :  { %v438_v57 = vpop.permute.xlu1 %437 }
 0x13a   :  { %v441_v28 = vsel %vm154_vm11, %v438_v57, %v440_v40  ;;  %v444_v42 = vsel %vm154_vm11, %v432_v25, %v438_v57  ;;  %vm1184_vm11 = vmmov %vm1183_vm7  ;;  %v59_v57 = vld [vmem:[#allocation8] sm:$0xff] }
 0x13b   :  { %v445_v43 = vsel %vm78_vm10, %v444_v42, 0.0  ;;  %v446_v45 = vsel %vm79_vm12, %v441_v28, 0.0  ;;  %vm1185_vm10 = vcmask 1039360   ;;  %v60_v28 = vld [vmem:[#allocation8 + $0x8] sm:$0xff] }
 0x13c   :  { %447 = vst [vmem:[#allocation2 + $0x18] sm:$0xf] %v445_v43  ;;  %vm1186_vm12 = vmmov %vm1185_vm10 }
 0x13d   :  { %448 = vst [vmem:[#allocation2 + $0x10] sm:$0xf] %v446_v45 }
 0x141   :  { %v452_v26 = vpop.permute.xlu0 %451 }
 0x149   :  { %v458_v47 = vpop.permute.xlu1 %457  ;;  %v495_v54 = vpop.permute.xlu2 %494 }
 0x14a   :  { %v461_v48 = vsel %vm1183_vm7, %v458_v47, %v460_v30  ;;  %v464_v49 = vsel %vm1184_vm11, %v452_v26, %v458_v47  ;;  %vm1187_vm7 = vcmask 924672  }
 0x14b   :  { %v465_v50 = vsel %vm876_vm1, %v464_v49, 0.0  ;;  %v466_v51 = vsel %vm889_vm3, %v461_v48, 0.0  ;;  %vm1188_vm11 = vmmov %vm1187_vm7 }
 0x14c   :  { %v469_v52 = vrot.slane %v465_v50, 4  ;;  %v470_v53 = vrot.slane %v466_v51, 4 }
 0x14e   :  { %473 = vst [vmem:[#allocation2 + $0x18] sm:$0xf0] %v469_v52 }
 0x14f   :  { %474 = vst [vmem:[#allocation2 + $0x10] sm:$0xf0] %v470_v53 }
 0x155   :  { %v576_v35 = vld [vmem:[#allocation2 + $0x18] sm:$0xff] }
 0x156   :  { %v577_v36 = vld [vmem:[#allocation2 + $0x10] sm:$0xff] }
 0x159   :  { %v488_v55 = vpop.permute.xlu1 %487  ;;  %v486_v58 = vpop.permute.xlu0 %485 }
 0x15a   :  { %v489_v61 = vsel %vm1185_vm10, %v486_v58, %v488_v55  ;;  %v497_v62 = vsel %vm1186_vm12, %v488_v55, %v495_v54  ;;  %v521_v3 = vpop.permute.xlu2 %520  ;;  %vm1189_vm10 = vmand %vm988_vm15, %vm876_vm1 }
 0x15b   :  { %v498_v63 = vsel %vm931_vm8, %v489_v61, 0.0  ;;  %v499_v0 = vsel %vm937_vm9, %v497_v62, 0.0  ;;  %vm1190_vm12 = vmand %vm999_vm5, %vm889_vm3 }
 0x15c   :  { %v502_v1 = vrot.slane %v498_v63, 4  ;;  %v503_v2 = vrot.slane %v499_v0, 4  ;;  %vm1194_vm8 = vmand %vm872_vm0, %vm876_vm1 }
 0x15e   :  { %506 = vst [vmem:[#allocation2 + $0x48] sm:$0xf0] %v502_v1 }
 0x15f   :  { %507 = vst [vmem:[#allocation2 + $0x28] sm:$0xf0] %v503_v2 }
 0x165   :  { %v578_v32 = vld [vmem:[#allocation2 + $0x48] sm:$0xff] }
 0x166   :  { %v579_v46 = vld [vmem:[#allocation2 + $0x28] sm:$0xff] }
 0x169   :  { %v514_v4 = vpop.permute.xlu1 %513  ;;  %v512_v5 = vpop.permute.xlu0 %511 }
 0x16a   :  { %v515_v6 = vsel %vm1187_vm7, %v512_v5, %v514_v4  ;;  %v523_v7 = vsel %vm1188_vm11, %v514_v4, %v521_v3  ;;  %v541_v10 = vpop.permute.xlu2 %540  ;;  %vm327_vm7 = vcmask 293888   ;;  %vm1192_vm11 = vcmask 138240  }
 0x16b   :  { %v524_v8 = vsel %vm1189_vm10, %v515_v6, 0.0  ;;  %v525_v9 = vsel %vm1190_vm12, %v523_v7, 0.0  ;;  %654 = vmatmul.msk.f32.vlgmr.msra.gmra.mxu0 %vm327_vm7, %v58_v19  ;;  %656 = vmatmul.msk.f32.vlgmr.msra.gmra.mxu1 %vm327_vm7, %v58_v19 }
 0x16c   :  { %526 = vst [vmem:[#allocation2 + $0x8] sm:$0xf] %v524_v8 }
 0x16d   :  { %527 = vst [vmem:[#allocation2 + $0x20] sm:$0xf] %v525_v9 }
 0x179   :  { %v534_v11 = vpop.permute.xlu1 %533  ;;  %v532_v12 = vpop.permute.xlu0 %531 }
 0x17a   :  { %v535_v13 = vsel %vm268_vm4, %v532_v12, %v534_v11  ;;  %v543_v14 = vsel %vm268_vm4, %v534_v11, %v541_v10  ;;  %v567_v20 = vpop.permute.xlu2 %566  ;;  %vm1191_vm4 = vmand %vm999_vm5, %vm937_vm9 }
 0x17b   :  { %v544_v15 = vsel %vm988_vm15, %v535_v13, 0.0  ;;  %v545_v16 = vsel %vm999_vm5, %v543_v14, 0.0  ;;  %vm1195_vm5 = vmand %vm885_vm2, %vm889_vm3 }
 0x17c   :  { %v548_v17 = vrot.slane %v544_v15, 4  ;;  %v549_v18 = vrot.slane %v545_v16, 4 }
 0x17e   :  { %552 = vst [vmem:[#allocation2 + $0x8] sm:$0xf0] %v548_v17 }
 0x17f   :  { %553 = vst [vmem:[#allocation2 + $0x20] sm:$0xf0] %v549_v18 }
 0x182   :  { %v394_v33 = vpop.permute.xlu2 %393 }
 0x185   :  { %v580_v39 = vld [vmem:[#allocation2 + $0x8] sm:$0xff] }
 0x186   :  { %v581_v31 = vld [vmem:[#allocation2 + $0x20] sm:$0xff] }
 0x189   :  { %v560_v21 = vpop.permute.xlu1 %559  ;;  %v558_v22 = vpop.permute.xlu0 %557 }
 0x18a   :  { %v561_v23 = vsel %vm299_vm6, %v558_v22, %v560_v21  ;;  %v569_v24 = vsel %vm299_vm6, %v560_v21, %v567_v20  ;;  %vm1193_vm6 = vmmov %vm1192_vm11 }
 0x18b   :  { %v570_v27 = vsel %vm82_vm14, %v561_v23, 0.0  ;;  %v571_v29 = vsel %vm1191_vm4, %v569_v24, 0.0 }
 0x18c   :  { %572 = vst [vmem:[#allocation2 + $0x40] sm:$0xf] %v570_v27 }
 0x18d   :  { %573 = vst [vmem:[#allocation2 + $0x38] sm:$0xf] %v571_v29 }
 0x191   :  { %v392_v34 = vpop.permute.xlu1 %391  ;;  %v386_v37 = vpop.permute.xlu0 %385 }
 0x192   :  { %v398_v44 = vsel %vm1192_vm11, %v386_v37, %v392_v34  ;;  %v395_v56 = vsel %vm1193_vm6, %v392_v34, %v394_v33 }
 0x193   :  { %v399_v59 = vsel %vm1194_vm8, %v398_v44, 0.0  ;;  %v400_v60 = vsel %vm1195_vm5, %v395_v56, 0.0  ;;  %v582_v38 = vld [vmem:[#allocation2 + $0x40] sm:$0xf] }
 0x194   :  { %401 = vst [vmem:[#allocation2 + $0x30] sm:$0xf] %v399_v59  ;;  %657 = vmatpush.msk.msra.mxu2 %vm331_vm13, %v582_v38  ;;  %v583_v41 = vld [vmem:[#allocation2 + $0x38] sm:$0xf] }
 0x195   :  { %402 = vst [vmem:[#allocation2] sm:$0xf] %v400_v60  ;;  %659 = vmatpush.msk.msra.mxu3 %vm331_vm13, %v583_v41 }
 0x196   :  { %602 = vmatpush.msra.mxu2 %v580_v39 }
 0x197   :  { %622 = vmatpush.msra.mxu3 %v581_v31 }
 0x198   :  { %603 = vmatpush.msra.mxu2 %v578_v32 }
 0x199   :  { %623 = vmatpush.msra.mxu3 %v579_v46 }
 0x19a   :  { %604 = vmatpush.msra.mxu2 %v576_v35 }
 0x19b   :  { %624 = vmatpush.msra.mxu3 %v577_v36  ;;  %v574_v40 = vld [vmem:[#allocation2 + $0x30] sm:$0xff] }
 0x19c   :  { %605 = vmatpush.msra.mxu2 %v574_v40  ;;  %v575_v25 = vld [vmem:[#allocation2] sm:$0xff] }
 0x19d   :  { %625 = vmatpush.msra.mxu3 %v575_v25  ;;  %658 = vmatmul.msk.f32.vlgmr.msra.gmra.mxu2 %vm327_vm7, %v58_v19 }
 0x19e   :  { %660 = vmatmul.msk.f32.vlgmr.msra.gmra.mxu3 %vm327_vm7, %v58_v19 }
 0x1e8   :  { %v355_v42 = vpop.f32.mrf.mxu0  ;;  %v375_v43 = vpop.f32.mrf.mxu1 }
 0x1e9   :  { %v356_v45 = vadd.f32 %v355_v42, %v59_v57  ;;  %v376_v26 = vadd.f32 %v375_v43, %v60_v28 }
 0x1eb   :  { %378 = vst [vmem:[#allocation9] sm:$0xff] %v356_v45 }
 0x1ec   :  { %379 = vst [vmem:[#allocation9 + $0x8] sm:$0xff] %v376_v26 }
 0x220   :  { %v607_v30 = vpop.f32.mrf.mxu2 }
 0x221   :  { %v608_v47 = vadd.f32 %v607_v30, %v59_v57  ;;  %v627_v48 = vpop.f32.mrf.mxu3 }
 0x222   :  { %v628_v49 = vadd.f32 %v627_v48, %v60_v28 }
 0x223   :  { %631 = vst [vmem:[#allocation9 + $0x10] sm:$0xff] %v608_v47 }
 0x224   :  { %632 = vst [vmem:[#allocation9 + $0x18] sm:$0xff] %v628_v49 }
 0x225   :  { %645 = dma.vmem_to_hbm [thread:$0]  %s638_s8, 512, %s640_s11, [#allocation5], %s792_s12, %s792_s12, %s784_s2  }
 0x226   :  { %776 = dma.done.wait [#allocation5], 512  }
 0x227   :  { %777 = vsyncadd [#allocation5], 4294966784 }
 0x228   :  { %650 = vsyncpa [#allocation4], 1 }
 0x229   :  { %651 = vsyncpa [#allocation7], 1 }
 0x22a   :  { %652 = vsyncpa [#allocation5], 1 }

</bundles_post_ra>
